<compile_context>
chip_gen: v5e
topology: v5e:2x2
jax: 0.10.0
libtpu: 0.0.40
codegen_flags: <defaults>
</compile_context>

<pallas_src>
import functools

import jax
import jax.numpy as jnp
from jax.experimental import pallas as pl
from jax.experimental.pallas import tpu as pltpu

EPS = 1e-5
_DEFAULT_BLOCK_BYTES = 4 * 1024 * 1024   # per x-block budget (fits v7x pipeline)
_VMEM_LIMIT_BYTES = 32 * 1024 * 1024     # explicit scoped-VMEM limit (v5e..v7x safe)


def _round_up(a, b):
    return ((a + b - 1) // b) * b


def _sublane_pack(dtype):
    """Sublane packing multiple: 8 for f32, 16 for bf16, 32 for int8/fp8."""
    return max(8, 32 // jnp.dtype(dtype).itemsize)


# --------------------------- kernels ---------------------------------------


def _make_single_pass_kernel(eps):
    def kernel(x_ref, gb_ref, o_ref):
        x = x_ref[...].astype(jnp.float32)                  # (mt, HW) lane-dense
        mean = jnp.mean(x, axis=1, keepdims=True)           # XLU reduce
        xc = x - mean
        var = jnp.mean(xc * xc, axis=1, keepdims=True)      # biased variance
        inv = jax.lax.rsqrt(var + eps)
        gb = gb_ref[...].astype(jnp.float32)                 # (mt, 2)
        g = gb[:, 0:1]
        b = gb[:, 1:2]
        o_ref[...] = (xc * (inv * g) + b).astype(o_ref.dtype)

    return kernel


def _make_stats_kernel(eps, hw_total):
    def kernel(x_ref, gb_ref, s_ref, sum_ref, ssq_ref):
        hi = pl.program_id(1)

        @pl.when(hi == 0)
        def _():
            sum_ref[...] = jnp.zeros_like(sum_ref)
            ssq_ref[...] = jnp.zeros_like(ssq_ref)

        x = x_ref[...].astype(jnp.float32)                  # (mt, hwt)
        sum_ref[...] += jnp.sum(x, axis=1, keepdims=True)
        ssq_ref[...] += jnp.sum(x * x, axis=1, keepdims=True)

        @pl.when(hi == pl.num_programs(1) - 1)
        def _():
            n = jnp.float32(hw_total)
            mean = sum_ref[...] / n
            var = ssq_ref[...] / n - mean * mean             # biased variance
            gb = gb_ref[...].astype(jnp.float32)
            scale = jax.lax.rsqrt(var + eps) * gb[:, 0:1]
            shift = gb[:, 1:2] - mean * scale
            s_ref[...] = jnp.concatenate([scale, shift], axis=1)

    return kernel


def _norm_kernel(x_ref, s_ref, o_ref):
    x = x_ref[...].astype(jnp.float32)                       # (mt, hwt)
    s = s_ref[...]                                           # (mt, 2) f32
    o_ref[...] = (x * s[:, 0:1] + s[:, 1:2]).astype(o_ref.dtype)


# --------------------------- tiling plan ------------------------------------


def _plan(M, HW, dtype, max_block_bytes):
    """Return (mode, m_tile, hw_tile)."""
    itemsize = jnp.dtype(dtype).itemsize
    pack = _sublane_pack(dtype)
    row_bytes = HW * itemsize

    if M * row_bytes <= max_block_bytes:
        mt = M
        # keep >= 2 grid tiles when possible so both v7x TensorCores get work
        if M >= 2 * pack:
            mt = _round_up(pl.cdiv(M, 2), pack)
        return ("single", mt, HW)

    if pack * row_bytes <= max_block_bytes:
        mt = (max_block_bytes // row_bytes) // pack * pack   # >= pack, < M
        return ("single", mt, HW)

    # Two-pass: chunk HW. hw_tile must be a multiple-of-128 divisor of HW so a
    # garbage-padded partial block can never pollute the reduction.
    mt = pack if M >= pack else M
    cand = (max_block_bytes // (mt * itemsize)) // 128 * 128
    while cand >= 128:
        if HW % cand == 0:
            return ("two_pass", mt, cand)
        cand -= 128
    # TODO(synk): HW with no multiple-of-128 divisor under the budget (odd
    # spatial sizes) falls back to a full-HW row block and the vmem limit.
    return ("single", mt, HW)


# --------------------------- wrapper ----------------------------------------


@functools.partial(jax.jit, static_argnames=("eps", "max_block_bytes"))
def adain2d_forward(x_nchw, weight, bias, eps=EPS,
                    max_block_bytes=_DEFAULT_BLOCK_BYTES):
    """AdaptiveInstanceNorm2d forward.

    x_nchw: (B, C, H, W);  weight, bias: (B*C,) externally-assigned AdaIN params.
    """
    B, C, H, W = x_nchw.shape
    M, HW = B * C, H * W

    # Free layout plumbing: (B, C, H, W) -> (M, HW) lane-dense; gamma/beta fused.
    x = x_nchw.reshape(M, HW)
    gb = jnp.stack([weight.astype(jnp.float32),
                    bias.astype(jnp.float32)], axis=-1)      # (M, 2)

    mode, mt, hwt = _plan(M, HW, x.dtype, max_block_bytes)
    n_m = pl.cdiv(M, mt)

    if mode == "single":
        out = pl.pallas_call(
            _make_single_pass_kernel(eps),
            out_shape=jax.ShapeDtypeStruct((M, HW), x.dtype),
            grid_spec=pltpu.PrefetchScalarGridSpec(
                num_scalar_prefetch=0,
                grid=(n_m,),
                in_specs=[
                    pl.BlockSpec((mt, HW), lambda i: (i, 0)),
                    pl.BlockSpec((mt, 2), lambda i: (i, 0)),
                ],
                out_specs=pl.BlockSpec((mt, HW), lambda i: (i, 0)),
            ),
            compiler_params=pltpu.CompilerParams(
                dimension_semantics=("parallel",),
                vmem_limit_bytes=_VMEM_LIMIT_BYTES,
            ),
        )(x, gb)
    else:
        n_hw = HW // hwt

        # Pass 1: per-row sum / sum-of-squares -> fused (scale, shift).
        stats = pl.pallas_call(
            _make_stats_kernel(eps, HW),
            out_shape=jax.ShapeDtypeStruct((M, 2), jnp.float32),
            grid_spec=pltpu.PrefetchScalarGridSpec(
                num_scalar_prefetch=0,
                grid=(n_m, n_hw),
                in_specs=[
                    pl.BlockSpec((mt, hwt), lambda i, j: (i, j)),
                    pl.BlockSpec((mt, 2), lambda i, j: (i, 0)),
                ],
                out_specs=pl.BlockSpec((mt, 2), lambda i, j: (i, 0)),
                scratch_shapes=[
                    pltpu.VMEM((mt, 1), jnp.float32),
                    pltpu.VMEM((mt, 1), jnp.float32),
                ],
            ),
            compiler_params=pltpu.CompilerParams(
                dimension_semantics=("parallel", "arbitrary"),
                vmem_limit_bytes=_VMEM_LIMIT_BYTES,
            ),
        )(x, gb)

        # Pass 2: y = x * scale + shift over the same HW tiles.
        out = pl.pallas_call(
            _norm_kernel,
            out_shape=jax.ShapeDtypeStruct((M, HW), x.dtype),
            grid_spec=pltpu.PrefetchScalarGridSpec(
                num_scalar_prefetch=0,
                grid=(n_m, n_hw),
                in_specs=[
                    pl.BlockSpec((mt, hwt), lambda i, j: (i, j)),
                    pl.BlockSpec((mt, 2), lambda i, j: (i, 0)),
                ],
                out_specs=pl.BlockSpec((mt, hwt), lambda i, j: (i, j)),
            ),
            compiler_params=pltpu.CompilerParams(
                dimension_semantics=("parallel", "parallel"),
                vmem_limit_bytes=_VMEM_LIMIT_BYTES,
            ),
        )(x, stats)

    return out.reshape(B, C, H, W)


# ---------------- pure-JAX reference (validation only) ----------------------
def _ref_adain(x_nchw, weight, bias, eps=EPS):
    B, C, H, W = x_nchw.shape
    mean = jnp.mean(x_nchw, axis=(2, 3), keepdims=True)
    var = jnp.mean((x_nchw - mean) ** 2, axis=(2, 3), keepdims=True)
    g = weight.reshape(B, C, 1, 1)
    b = bias.reshape(B, C, 1, 1)
    return (x_nchw - mean) * jax.lax.rsqrt(var + eps) * g + b


if __name__ == "__main__":
    key = jax.random.PRNGKey(0)
    B, C, H, W = 2, 4, 16, 16

    kx, kw, kb = jax.random.split(key, 3)
    x = jax.random.normal(kx, (B, C, H, W), jnp.float32)
    # AdaIN gamma/beta are assigned externally per (batch, channel): shape (B*C,)
    weight = 1.0 + 0.5 * jax.random.normal(kw, (B * C,), jnp.float32)
    bias = 0.1 * jax.random.normal(kb, (B * C,), jnp.float32)

    ref = _ref_adain(x, weight, bias)

    # Default (single-pass, full-HW-row) path.
    out = jax.block_until_ready(adain2d_forward(x, weight, bias))
    assert out.shape == (B, C, H, W)
    err1 = float(jnp.max(jnp.abs(out - ref)))
    assert jnp.allclose(out, ref, atol=1e-5, rtol=1e-5), f"single-pass err {err1}"

    # Force the chunked-HW two-pass path on the same data (tiny block budget).
    out2 = jax.block_until_ready(
        adain2d_forward(x, weight, bias, max_block_bytes=4096))
    err2 = float(jnp.max(jnp.abs(out2 - ref)))
    assert jnp.allclose(out2, ref, atol=1e-4, rtol=1e-4), f"two-pass err {err2}"

    print("KERNEL_OK")
</pallas_src>

<mosaic_0001>
module attributes {stable_mosaic.version = 11 : i64} {
  func.func @kernel(%arg0: i32, %arg1: memref<8x256xf32, #tpu.memory_space<vmem>>, %arg2: memref<8x2xf32, #tpu.memory_space<vmem>>, %arg3: memref<8x256xf32, #tpu.memory_space<vmem>>) attributes {dimension_semantics = [#tpu.dimension_semantics<parallel>], iteration_bounds = array<i64: 1>, scalar_prefetch = 0 : i64, scratch_operands = 0 : i64, tpu.core_type = #tpu.core_type<tc>, window_params = [{transform_indices = @transform_0, window_bounds = array<i64: 8, 256>}, {transform_indices = @transform_1, window_bounds = array<i64: 8, 2>}, {transform_indices = @transform_2, window_bounds = array<i64: 8, 256>}]} {
    %c0 = arith.constant 0 : index
    %c0_0 = arith.constant 0 : index
    %0 = vector.load %arg1[%c0, %c0_0] : memref<8x256xf32, #tpu.memory_space<vmem>>, vector<8x256xf32>
    %cst = arith.constant dense<0.000000e+00> : vector<8xf32>
    %1 = vector.multi_reduction <add>, %0, %cst [1] : vector<8x256xf32> to vector<8xf32>
    %2 = vector.shape_cast %1 : vector<8xf32> to vector<8x1xf32>
    %cst_1 = arith.constant 2.560000e+02 : f32
    %3 = vector.broadcast %cst_1 : f32 to vector<8x1xf32>
    %4 = arith.divf %2, %3 : vector<8x1xf32>
    %5 = vector.broadcast %4 : vector<8x1xf32> to vector<8x256xf32>
    %6 = arith.subf %0, %5 : vector<8x256xf32>
    %7 = arith.mulf %6, %6 : vector<8x256xf32>
    %cst_2 = arith.constant dense<0.000000e+00> : vector<8xf32>
    %8 = vector.multi_reduction <add>, %7, %cst_2 [1] : vector<8x256xf32> to vector<8xf32>
    %9 = vector.shape_cast %8 : vector<8xf32> to vector<8x1xf32>
    %cst_3 = arith.constant 2.560000e+02 : f32
    %10 = vector.broadcast %cst_3 : f32 to vector<8x1xf32>
    %11 = arith.divf %9, %10 : vector<8x1xf32>
    %cst_4 = arith.constant 9.99999974E-6 : f32
    %12 = vector.broadcast %cst_4 : f32 to vector<8x1xf32>
    %13 = arith.addf %11, %12 : vector<8x1xf32>
    %14 = math.rsqrt %13 : vector<8x1xf32>
    %c0_5 = arith.constant 0 : index
    %c0_6 = arith.constant 0 : index
    %15 = vector.load %arg2[%c0_5, %c0_6] : memref<8x2xf32, #tpu.memory_space<vmem>>, vector<8x2xf32>
    %16 = vector.extract_strided_slice %15 {offsets = [0, 0], sizes = [8, 1], strides = [1, 1]} : vector<8x2xf32> to vector<8x1xf32>
    %17 = vector.extract_strided_slice %15 {offsets = [0, 1], sizes = [8, 1], strides = [1, 1]} : vector<8x2xf32> to vector<8x1xf32>
    %18 = arith.mulf %14, %16 : vector<8x1xf32>
    %19 = vector.broadcast %18 : vector<8x1xf32> to vector<8x256xf32>
    %20 = arith.mulf %6, %19 : vector<8x256xf32>
    %21 = vector.broadcast %17 : vector<8x1xf32> to vector<8x256xf32>
    %22 = arith.addf %20, %21 : vector<8x256xf32>
    %c0_7 = arith.constant 0 : index
    %c0_8 = arith.constant 0 : index
    %23 = vector.load %arg3[%c0_7, %c0_8] : memref<8x256xf32, #tpu.memory_space<vmem>>, vector<8x256xf32>
    tpu.vector_store %arg3[%c0_7, %c0_8], %22 {strides = array<i32>} : memref<8x256xf32, #tpu.memory_space<vmem>>, vector<8x256xf32>,
    return
  }
  func.func @transform_0(%arg0: i32) -> (i32, i32) {
    %c0_i32 = arith.constant 0 : i32
    %c0_i32_0 = arith.constant 0 : i32
    return %arg0, %c0_i32 : i32, i32
  }
  func.func @transform_1(%arg0: i32) -> (i32, i32) {
    %c0_i32 = arith.constant 0 : i32
    %c0_i32_0 = arith.constant 0 : i32
    return %arg0, %c0_i32 : i32, i32
  }
  func.func @transform_2(%arg0: i32) -> (i32, i32) {
    %c0_i32 = arith.constant 0 : i32
    %c0_i32_0 = arith.constant 0 : i32
    return %arg0, %c0_i32 : i32, i32
  }
}

</mosaic_0001>

<bundles_post_ra>
// kernel: adain2d_forward.1
= control target key start
LH: loop header
LB: loop body
LE: loop exit
PB: predicated region body
PF: predicated region fallthrough
CT: control target
= control target key end

     0   :  { %v75_v3 = vmov 256.0   ;;  %v76_v17 = vmov 0   ;;  %v77_v18 = vmov 1   ;;  %s108_s0 = inlined_call_operand.vmem [shape: f32[8,256], index: 0, kind: input, shape index: {}]   ;;  %s109_s1 = inlined_call_operand.vmem [shape: f32[8,2], index: 1, kind: input, shape index: {}]   ;;  %s110_s2 = inlined_call_operand.vmem [shape: f32[8,256], index: 2, kind: output, shape index: {}]  }
   0x1   :  { %v11_v0 = vld [vmem:[%s108_s0] sm:$0xff]  ;;  %v12_v1 = vld [vmem:[%s108_s0 + $0x8] sm:$0xff]  ;;  %71 = vrcp.f32 %v75_v3  ;;  %68 = vset.pattern.permute.xlu1 %v76_v17  ;;  %70 = vset.pattern.permute.xlu0 %v77_v18 }
   0x2   :  { %v13_v2 = vadd.f32 %v12_v1, %v11_v0  ;;  %v43_v28 = vld [vmem:[%s109_s1] sm:$0xff] }
   0x4   :  { %14 = vadd.xlane.f32.xlu0 %v13_v2 }
   0x7   :  { %v72_v4 = vpop.eup %71 }
   0x8   :  { %v17_v5 = vmul.f32 256.0, %v72_v4  ;;  %vm21_vm0 = vweird.f32 %v72_v4 }
   0xa   :  { %v18_v6 = vsub.f32 1.0, %v17_v5 }
   0xc   :  { %v19_v7 = vmul.f32 %v72_v4, %v18_v6 }
   0xe   :  { %v20_v8 = vadd.f32 %v72_v4, %v19_v7 }
  0x10   :  { %v22_v9 = vsel %vm21_vm0, %v72_v4, %v20_v8 }
  0x77   :  { %v15_v10 = vpop.xlane.xlu0 %14 }
  0x78   :  { %v23_v11 = vmul.f32 %v22_v9, %v15_v10 }
  0x7a   :  { %v24_v12 = vsub.f32 %v11_v0, %v23_v11  ;;  %v25_v13 = vsub.f32 %v12_v1, %v23_v11 }
  0x7c   :  { %v26_v14 = vmul.f32 %v24_v12, %v24_v12  ;;  %v27_v15 = vmul.f32 %v25_v13, %v25_v13 }
  0x7e   :  { %v28_v16 = vadd.f32 %v27_v15, %v26_v14 }
  0x80   :  { %29 = vadd.xlane.f32.xlu0 %v28_v16 }
  0xf3   :  { %v30_v19 = vpop.xlane.xlu0 %29 }
  0xf4   :  { %v31_v20 = vmul.f32 %v30_v19, %v22_v9 }
  0xf6   :  { %v32_v21 = vadd.f32 1e-05, %v31_v20 }
  0xf8   :  { %73 = vrsqrt.f32 %v32_v21  ;;  %vm39_vm2 = vweird.f32 %v32_v21 }
  0xfe   :  { %v74_v22 = vpop.eup %73 }
  0xff   :  { %v34_v23 = vmul.f32 %v74_v22, %v32_v21  ;;  %vm40_vm1 = vweird.f32 %v74_v22 }
 0x100   :  { %vm41_vm3 = vmor %vm39_vm2, %vm40_vm1 }
 0x101   :  { %v35_v24 = vmul.f32 %v74_v22, %v34_v23 }
 0x103   :  { %v36_v25 = vmul.f32 0.5, %v35_v24 }
 0x105   :  { %v37_v26 = vsub.f32 1.5, %v36_v25 }
 0x107   :  { %v38_v27 = vmul.f32 %v74_v22, %v37_v26 }
 0x109   :  { %v42_v29 = vsel %vm41_vm3, %v74_v22, %v38_v27 }
 0x10a   :  { %v44_v30 = vmul.f32 %v43_v28, %v42_v29 }
 0x10c   :  { %47 = vperm.xlu1 %68, %v44_v30  }
 0x114   :  { %69 = vset.pattern.permute.xlu1 %v77_v18 }
 0x115   :  { %54 = vperm.xlu1 %69, %v43_v28  }
 0x17e   :  { %v48_v31 = vpop.permute.xlu1 %47 }
 0x17f   :  { %v50_v32 = vmul.f32 %v48_v31, %v24_v12  ;;  %v51_v33 = vmul.f32 %v48_v31, %v25_v13 }
 0x187   :  { %v55_v34 = vpop.permute.xlu1 %54 }
 0x188   :  { %v57_v35 = vadd.f32 %v55_v34, %v50_v32  ;;  %v58_v36 = vadd.f32 %v55_v34, %v51_v33 }
 0x18a   :  { %59 = vst [vmem:[%s110_s2] sm:$0xff] %v57_v35 }
 0x18b   :  { %60 = vst [vmem:[%s110_s2 + $0x8] sm:$0xff] %v58_v36 }

</bundles_post_ra>
